<compile_context>
chip_gen: v7x
topology: tpu7x:2x2x1
jax: 0.10.0
libtpu: 0.0.40
codegen_flags: <defaults>
</compile_context>

<pallas_src>
import math
import functools

import jax
import jax.numpy as jnp
from jax.experimental import pallas as pl
from jax.experimental.pallas import tpu as pltpu


def _round_up(n, m):
    return ((n + m - 1) // m) * m


def _make_kernel(n_blocks):
    """Kernel body: full PeriodicMLP forward for one (TB, F) batch tile."""

    def kernel(x_ref, s_ref, wc_ref, ws_ref, nb_ref, *rest):
        block_refs = rest[:2 * n_blocks]
        wo_ref = rest[2 * n_blocks]
        bo_ref = rest[2 * n_blocks + 1]
        o_ref = rest[2 * n_blocks + 2]

        # Phase expansion: p[:, f*K + k] = 2*pi*freq[f, k] * x[:, f].
        # S is block-diagonal, so each output column has exactly one nonzero term.
        x = x_ref[...]                                                    # (TB, F)
        p = jnp.dot(x, s_ref[...], preferred_element_type=jnp.float32)   # (TB, F*K)

        cos_p = jnp.cos(p)
        sin_p = jnp.sin(p)

        # Per-feature NLinear as two block-diagonal matmuls; the result is already the
        # flattened (TB, F*D_emb) layout (zero-padded to a 128-lane multiple).
        cdt = wc_ref.dtype
        h = (jnp.dot(cos_p.astype(cdt), wc_ref[...], preferred_element_type=jnp.float32)
             + jnp.dot(sin_p.astype(cdt), ws_ref[...], preferred_element_type=jnp.float32)
             + nb_ref[...])
        h = jnp.maximum(h, 0.0)

        # MLP blocks: Linear -> ReLU (-> Dropout, identity in eval).
        for i in range(n_blocks):
            w_ref = block_refs[2 * i]
            b_ref = block_refs[2 * i + 1]
            h = jnp.dot(h.astype(w_ref.dtype), w_ref[...],
                        preferred_element_type=jnp.float32) + b_ref[...]
            h = jnp.maximum(h, 0.0)

        # Output head (columns zero-padded to a lane-dense multiple of 128).
        out = jnp.dot(h.astype(wo_ref.dtype), wo_ref[...],
                      preferred_element_type=jnp.float32) + bo_ref[...]
        o_ref[...] = out.astype(o_ref.dtype)

    return kernel


def periodic_mlp_forward(x, params, *, n_blocks, block_batch=256,
                         compute_dtype=jnp.float32, lane=128):
    """Fold/pad params once, then launch a batch-gridded Pallas call."""
    B, F = x.shape
    freq = params["freq"]                     # (F, K)
    nw = params["nlin_w"]                     # (F, 2K, D_emb)
    nb = params["nlin_b"]                     # (F, D_emb)
    K = freq.shape[1]
    D = nw.shape[2]
    hidden = params["w0"].shape[1]
    d_out = params["w_out"].shape[1]

    FK = F * K
    D1 = F * D                                # flattened embedding width
    D1p = _round_up(D1, lane)
    Hp = _round_up(hidden, lane)
    DOp = _round_up(d_out, lane)

    f32 = jnp.float32
    eye_f = jnp.eye(F, dtype=f32)

    def pad2(a, rows, cols):
        a = a.astype(f32)
        return jnp.pad(a, ((0, rows - a.shape[0]), (0, cols - a.shape[1])))

    # Phase-expansion matrix (kept f32: its output feeds cos/sin).
    s_mat = jnp.einsum("gf,fk->gfk", eye_f, (2.0 * math.pi) * freq.astype(f32))
    s_mat = s_mat.reshape(F, FK)
    # Block-diagonal NLinear halves + flattened bias, zero-padded to 128-lane widths.
    wc = jnp.einsum("fg,fkd->fkgd", eye_f, nw[:, :K, :].astype(f32)).reshape(FK, D1)
    ws = jnp.einsum("fg,fkd->fkgd", eye_f, nw[:, K:, :].astype(f32)).reshape(FK, D1)
    wc = pad2(wc, FK, D1p).astype(compute_dtype)
    ws = pad2(ws, FK, D1p).astype(compute_dtype)
    nb_flat = pad2(nb.reshape(1, D1), 1, D1p)

    block_inputs = []
    in_dims_p = [D1p] + [Hp] * (n_blocks - 1)
    for i in range(n_blocks):
        w = pad2(params[f"w{i}"], in_dims_p[i], Hp).astype(compute_dtype)
        b = pad2(params[f"b{i}"], 1, Hp)
        block_inputs += [w, b]
    w_out = pad2(params["w_out"], Hp, DOp).astype(compute_dtype)
    b_out = pad2(params["b_out"], 1, DOp)

    # Batch tiling: TB rows per grid step (multiple of 8 sublanes); batch zero-padded.
    TB = max(8, min(_round_up(block_batch, 8), _round_up(B, 8)))
    B_pad = _round_up(B, TB)
    x_pad = jnp.pad(x.astype(f32), ((0, B_pad - B), (0, 0)))
    grid = (B_pad // TB,)

    inputs = [x_pad, s_mat, wc, ws, nb_flat] + block_inputs + [w_out, b_out]

    def _const(i):
        return (0, 0)

    in_specs = ([pl.BlockSpec((TB, F), lambda i: (i, 0))]
                + [pl.BlockSpec(a.shape, _const) for a in inputs[1:]])
    out_specs = pl.BlockSpec((TB, DOp), lambda i: (i, 0))

    out_pad = pl.pallas_call(
        _make_kernel(n_blocks),
        out_shape=jax.ShapeDtypeStruct((B_pad, DOp), jnp.float32),
        grid=grid,
        in_specs=in_specs,
        out_specs=out_specs,
        compiler_params=pltpu.CompilerParams(
            dimension_semantics=("parallel",),
            vmem_limit_bytes=32 * 1024 * 1024),
    )(*inputs)

    # Strip the batch / lane padding outside the kernel.
    return out_pad[:B, :d_out]


def reference_forward(x, params, *, n_blocks):
    """Pure-JAX reference (f32, highest matmul precision) for correctness checking."""
    hi = jax.lax.Precision.HIGHEST
    freq = params["freq"]
    p = 2.0 * math.pi * x[:, :, None] * freq[None, :, :]
    emb = jnp.concatenate([jnp.cos(p), jnp.sin(p)], axis=-1)        # (B, F, 2K)
    h = jnp.einsum("bfk,fkd->bfd", emb, params["nlin_w"], precision=hi)
    h = h + params["nlin_b"][None]
    h = jnp.maximum(h, 0.0)
    h = h.reshape(x.shape[0], -1)
    for i in range(n_blocks):
        h = jnp.maximum(jnp.dot(h, params[f"w{i}"], precision=hi) + params[f"b{i}"], 0.0)
    return jnp.dot(h, params["w_out"], precision=hi) + params["b_out"]


def init_params(key, *, input_size, output_size, d_embedding, n_frequencies,
                frequency_init_scale, num_layers, hidden_size):
    """Deterministic synthetic parameter init (matches module shapes)."""
    keys = jax.random.split(key, 4 + 2 * num_layers + 2)
    ki = iter(keys)
    params = {}
    # PeriodicEmbeddings: frequencies ~ N(0, sigma), per-feature NLinear.
    params["freq"] = frequency_init_scale * jax.random.normal(
        next(ki), (input_size, n_frequencies), jnp.float32)
    params["nlin_w"] = 0.1 * jax.random.normal(
        next(ki), (input_size, 2 * n_frequencies, d_embedding), jnp.float32)
    params["nlin_b"] = 0.1 * jax.random.normal(
        next(ki), (input_size, d_embedding), jnp.float32)
    # MLP blocks.
    d_in = d_embedding * input_size
    for i in range(num_layers):
        fan_in = d_in if i == 0 else hidden_size
        params[f"w{i}"] = (1.0 / math.sqrt(fan_in)) * jax.random.normal(
            next(ki), (fan_in, hidden_size), jnp.float32)
        params[f"b{i}"] = 0.05 * jax.random.normal(
            next(ki), (1, hidden_size), jnp.float32)
    # Output head.
    params["w_out"] = (1.0 / math.sqrt(hidden_size)) * jax.random.normal(
        next(ki), (hidden_size, output_size), jnp.float32)
    params["b_out"] = 0.05 * jax.random.normal(
        next(ki), (1, output_size), jnp.float32)
    return params


if __name__ == "__main__":
    # Small config consistent with the module; B=40 with TB=16 exercises the batch
    # grid (3 steps) and the batch-padding path.
    B = 40             # batch
    input_size = 4     # number of tabular features
    output_size = 3
    d_embedding = 16
    n_frequencies = 8
    frequency_init_scale = 0.25
    num_layers = 2
    hidden_size = 64

    key = jax.random.PRNGKey(0)
    kx, kp = jax.random.split(key)
    x = jax.random.normal(kx, (B, input_size), jnp.float32)

    params = init_params(
        kp,
        input_size=input_size,
        output_size=output_size,
        d_embedding=d_embedding,
        n_frequencies=n_frequencies,
        frequency_init_scale=frequency_init_scale,
        num_layers=num_layers,
        hidden_size=hidden_size,
    )

    fwd = jax.jit(functools.partial(periodic_mlp_forward, n_blocks=num_layers,
                                    block_batch=16))
    out = jax.block_until_ready(fwd(x, params))

    ref = reference_forward(x, params, n_blocks=num_layers)
    assert out.shape == (B, output_size), out.shape
    # Small slack for MXU f32 emulation / reassociation from the block-diagonal folding.
    assert jnp.allclose(out, ref, atol=2e-4, rtol=2e-4), \
        float(jnp.max(jnp.abs(out - ref)))

    print("KERNEL_OK")
</pallas_src>

<mosaic_0001>
module attributes {stable_mosaic.version = 11 : i64} {
  func.func @kernel(%arg0: i32, %arg1: memref<16x4xf32, #tpu.memory_space<vmem>>, %arg2: memref<4x32xf32, #tpu.memory_space<vmem>>, %arg3: memref<32x128xf32, #tpu.memory_space<vmem>>, %arg4: memref<32x128xf32, #tpu.memory_space<vmem>>, %arg5: memref<1x128xf32, #tpu.memory_space<vmem>>, %arg6: memref<128x128xf32, #tpu.memory_space<vmem>>, %arg7: memref<1x128xf32, #tpu.memory_space<vmem>>, %arg8: memref<128x128xf32, #tpu.memory_space<vmem>>, %arg9: memref<1x128xf32, #tpu.memory_space<vmem>>, %arg10: memref<128x128xf32, #tpu.memory_space<vmem>>, %arg11: memref<1x128xf32, #tpu.memory_space<vmem>>, %arg12: memref<16x128xf32, #tpu.memory_space<vmem>>) attributes {dimension_semantics = [#tpu.dimension_semantics<parallel>], iteration_bounds = array<i64: 3>, scalar_prefetch = 0 : i64, scratch_operands = 0 : i64, tpu.core_type = #tpu.core_type<tc>, window_params = [{transform_indices = @transform_0, window_bounds = array<i64: 16, 4>}, {pipeline_mode = #tpu.pipeline_mode<synchronous>, transform_indices = @transform_1, window_bounds = array<i64: 4, 32>}, {pipeline_mode = #tpu.pipeline_mode<synchronous>, transform_indices = @transform_2, window_bounds = array<i64: 32, 128>}, {pipeline_mode = #tpu.pipeline_mode<synchronous>, transform_indices = @transform_3, window_bounds = array<i64: 32, 128>}, {pipeline_mode = #tpu.pipeline_mode<synchronous>, transform_indices = @transform_4, window_bounds = array<i64: 1, 128>}, {pipeline_mode = #tpu.pipeline_mode<synchronous>, transform_indices = @transform_5, window_bounds = array<i64: 128, 128>}, {pipeline_mode = #tpu.pipeline_mode<synchronous>, transform_indices = @transform_6, window_bounds = array<i64: 1, 128>}, {pipeline_mode = #tpu.pipeline_mode<synchronous>, transform_indices = @transform_7, window_bounds = array<i64: 128, 128>}, {pipeline_mode = #tpu.pipeline_mode<synchronous>, transform_indices = @transform_8, window_bounds = array<i64: 1, 128>}, {pipeline_mode = #tpu.pipeline_mode<synchronous>, transform_indices = @transform_9, window_bounds = array<i64: 128, 128>}, {pipeline_mode = #tpu.pipeline_mode<synchronous>, transform_indices = @transform_10, window_bounds = array<i64: 1, 128>}, {transform_indices = @transform_11, window_bounds = array<i64: 16, 128>}]} {
    %c0 = arith.constant 0 : index
    %c0_0 = arith.constant 0 : index
    %0 = vector.load %arg1[%c0, %c0_0] : memref<16x4xf32, #tpu.memory_space<vmem>>, vector<16x4xf32>
    %c0_1 = arith.constant 0 : index
    %c0_2 = arith.constant 0 : index
    %1 = vector.load %arg2[%c0_1, %c0_2] : memref<4x32xf32, #tpu.memory_space<vmem>>, vector<4x32xf32>
    %cst = arith.constant dense<0.000000e+00> : vector<16x32xf32>
    %2 = tpu.matmul %0, %1, %cst {dimension_numbers = #tpu.dot_dimension_numbers<[1], [0], [0], [1], [0, 0, 1, 1], [], []>} : vector<16x4xf32>, vector<4x32xf32>, vector<16x32xf32> -> vector<16x32xf32>
    %3 = math.cos %2 : vector<16x32xf32>
    %4 = math.sin %2 : vector<16x32xf32>
    %c0_3 = arith.constant 0 : index
    %c0_4 = arith.constant 0 : index
    %5 = vector.load %arg3[%c0_3, %c0_4] : memref<32x128xf32, #tpu.memory_space<vmem>>, vector<32x128xf32>
    %cst_5 = arith.constant dense<0.000000e+00> : vector<16x128xf32>
    %6 = tpu.matmul %3, %5, %cst_5 {dimension_numbers = #tpu.dot_dimension_numbers<[1], [0], [0], [1], [0, 0, 1, 1], [], []>} : vector<16x32xf32>, vector<32x128xf32>, vector<16x128xf32> -> vector<16x128xf32>
    %c0_6 = arith.constant 0 : index
    %c0_7 = arith.constant 0 : index
    %7 = vector.load %arg4[%c0_6, %c0_7] : memref<32x128xf32, #tpu.memory_space<vmem>>, vector<32x128xf32>
    %cst_8 = arith.constant dense<0.000000e+00> : vector<16x128xf32>
    %8 = tpu.matmul %4, %7, %cst_8 {dimension_numbers = #tpu.dot_dimension_numbers<[1], [0], [0], [1], [0, 0, 1, 1], [], []>} : vector<16x32xf32>, vector<32x128xf32>, vector<16x128xf32> -> vector<16x128xf32>
    %9 = arith.addf %6, %8 : vector<16x128xf32>
    %c0_9 = arith.constant 0 : index
    %c0_10 = arith.constant 0 : index
    %10 = vector.load %arg5[%c0_9, %c0_10] : memref<1x128xf32, #tpu.memory_space<vmem>>, vector<1x128xf32>
    %11 = vector.broadcast %10 : vector<1x128xf32> to vector<16x128xf32>
    %12 = arith.addf %9, %11 : vector<16x128xf32>
    %cst_11 = arith.constant 0.000000e+00 : f32
    %13 = vector.broadcast %cst_11 : f32 to vector<16x128xf32>
    %14 = arith.maximumf %12, %13 : vector<16x128xf32>
    %c0_12 = arith.constant 0 : index
    %c0_13 = arith.constant 0 : index
    %15 = vector.load %arg6[%c0_12, %c0_13] : memref<128x128xf32, #tpu.memory_space<vmem>>, vector<128x128xf32>
    %cst_14 = arith.constant dense<0.000000e+00> : vector<16x128xf32>
    %16 = tpu.matmul %14, %15, %cst_14 {dimension_numbers = #tpu.dot_dimension_numbers<[1], [0], [0], [1], [0, 0, 1, 1], [], []>} : vector<16x128xf32>, vector<128x128xf32>, vector<16x128xf32> -> vector<16x128xf32>
    %c0_15 = arith.constant 0 : index
    %c0_16 = arith.constant 0 : index
    %17 = vector.load %arg7[%c0_15, %c0_16] : memref<1x128xf32, #tpu.memory_space<vmem>>, vector<1x128xf32>
    %18 = vector.broadcast %17 : vector<1x128xf32> to vector<16x128xf32>
    %19 = arith.addf %16, %18 : vector<16x128xf32>
    %cst_17 = arith.constant 0.000000e+00 : f32
    %20 = vector.broadcast %cst_17 : f32 to vector<16x128xf32>
    %21 = arith.maximumf %19, %20 : vector<16x128xf32>
    %c0_18 = arith.constant 0 : index
    %c0_19 = arith.constant 0 : index
    %22 = vector.load %arg8[%c0_18, %c0_19] : memref<128x128xf32, #tpu.memory_space<vmem>>, vector<128x128xf32>
    %cst_20 = arith.constant dense<0.000000e+00> : vector<16x128xf32>
    %23 = tpu.matmul %21, %22, %cst_20 {dimension_numbers = #tpu.dot_dimension_numbers<[1], [0], [0], [1], [0, 0, 1, 1], [], []>} : vector<16x128xf32>, vector<128x128xf32>, vector<16x128xf32> -> vector<16x128xf32>
    %c0_21 = arith.constant 0 : index
    %c0_22 = arith.constant 0 : index
    %24 = vector.load %arg9[%c0_21, %c0_22] : memref<1x128xf32, #tpu.memory_space<vmem>>, vector<1x128xf32>
    %25 = vector.broadcast %24 : vector<1x128xf32> to vector<16x128xf32>
    %26 = arith.addf %23, %25 : vector<16x128xf32>
    %cst_23 = arith.constant 0.000000e+00 : f32
    %27 = vector.broadcast %cst_23 : f32 to vector<16x128xf32>
    %28 = arith.maximumf %26, %27 : vector<16x128xf32>
    %c0_24 = arith.constant 0 : index
    %c0_25 = arith.constant 0 : index
    %29 = vector.load %arg10[%c0_24, %c0_25] : memref<128x128xf32, #tpu.memory_space<vmem>>, vector<128x128xf32>
    %cst_26 = arith.constant dense<0.000000e+00> : vector<16x128xf32>
    %30 = tpu.matmul %28, %29, %cst_26 {dimension_numbers = #tpu.dot_dimension_numbers<[1], [0], [0], [1], [0, 0, 1, 1], [], []>} : vector<16x128xf32>, vector<128x128xf32>, vector<16x128xf32> -> vector<16x128xf32>
    %c0_27 = arith.constant 0 : index
    %c0_28 = arith.constant 0 : index
    %31 = vector.load %arg11[%c0_27, %c0_28] : memref<1x128xf32, #tpu.memory_space<vmem>>, vector<1x128xf32>
    %32 = vector.broadcast %31 : vector<1x128xf32> to vector<16x128xf32>
    %33 = arith.addf %30, %32 : vector<16x128xf32>
    %c0_29 = arith.constant 0 : index
    %c0_30 = arith.constant 0 : index
    %34 = vector.load %arg12[%c0_29, %c0_30] : memref<16x128xf32, #tpu.memory_space<vmem>>, vector<16x128xf32>
    tpu.vector_store %arg12[%c0_29, %c0_30], %33 {strides = array<i32>} : memref<16x128xf32, #tpu.memory_space<vmem>>, vector<16x128xf32>,
    return
  }
  func.func @transform_0(%arg0: i32) -> (i32, i32) {
    %c0_i32 = arith.constant 0 : i32
    %c0_i32_0 = arith.constant 0 : i32
    return %arg0, %c0_i32 : i32, i32
  }
  func.func @transform_1(%arg0: i32) -> (i32, i32) {
    %c0_i32 = arith.constant 0 : i32
    %c0_i32_0 = arith.constant 0 : i32
    %c0_i32_1 = arith.constant 0 : i32
    return %c0_i32, %c0_i32_0 : i32, i32
  }
  func.func @transform_2(%arg0: i32) -> (i32, i32) {
    %c0_i32 = arith.constant 0 : i32
    %c0_i32_0 = arith.constant 0 : i32
    %c0_i32_1 = arith.constant 0 : i32
    return %c0_i32, %c0_i32_0 : i32, i32
  }
  func.func @transform_3(%arg0: i32) -> (i32, i32) {
    %c0_i32 = arith.constant 0 : i32
    %c0_i32_0 = arith.constant 0 : i32
    %c0_i32_1 = arith.constant 0 : i32
    return %c0_i32, %c0_i32_0 : i32, i32
  }
  func.func @transform_4(%arg0: i32) -> (i32, i32) {
    %c0_i32 = arith.constant 0 : i32
    %c0_i32_0 = arith.constant 0 : i32
    %c0_i32_1 = arith.constant 0 : i32
    return %c0_i32, %c0_i32_0 : i32, i32
  }
  func.func @transform_5(%arg0: i32) -> (i32, i32) {
    %c0_i32 = arith.constant 0 : i32
    %c0_i32_0 = arith.constant 0 : i32
    %c0_i32_1 = arith.constant 0 : i32
    return %c0_i32, %c0_i32_0 : i32, i32
  }
  func.func @transform_6(%arg0: i32) -> (i32, i32) {
    %c0_i32 = arith.constant 0 : i32
    %c0_i32_0 = arith.constant 0 : i32
    %c0_i32_1 = arith.constant 0 : i32
    return %c0_i32, %c0_i32_0 : i32, i32
  }
  func.func @transform_7(%arg0: i32) -> (i32, i32) {
    %c0_i32 = arith.constant 0 : i32
    %c0_i32_0 = arith.constant 0 : i32
    %c0_i32_1 = arith.constant 0 : i32
    return %c0_i32, %c0_i32_0 : i32, i32
  }
  func.func @transform_8(%arg0: i32) -> (i32, i32) {
    %c0_i32 = arith.constant 0 : i32
    %c0_i32_0 = arith.constant 0 : i32
    %c0_i32_1 = arith.constant 0 : i32
    return %c0_i32, %c0_i32_0 : i32, i32
  }
  func.func @transform_9(%arg0: i32) -> (i32, i32) {
    %c0_i32 = arith.constant 0 : i32
    %c0_i32_0 = arith.constant 0 : i32
    %c0_i32_1 = arith.constant 0 : i32
    return %c0_i32, %c0_i32_0 : i32, i32
  }
  func.func @transform_10(%arg0: i32) -> (i32, i32) {
    %c0_i32 = arith.constant 0 : i32
    %c0_i32_0 = arith.constant 0 : i32
    %c0_i32_1 = arith.constant 0 : i32
    return %c0_i32, %c0_i32_0 : i32, i32
  }
  func.func @transform_11(%arg0: i32) -> (i32, i32) {
    %c0_i32 = arith.constant 0 : i32
    %c0_i32_0 = arith.constant 0 : i32
    return %arg0, %c0_i32 : i32, i32
  }
}

</mosaic_0001>

<bundles_post_ra>
// kernel: periodic_mlp_forward.1
= control target key start
LH: loop header
LB: loop body
LE: loop exit
PB: predicated region body
PF: predicated region fallthrough
CT: control target
= control target key end

     0   :  { %s1888_s17 = smov 0   ;;  %s2177_s0 = inlined_call_operand.vmem [shape: f32[48,4], index: 0, kind: input, shape index: {}]   ;;  %s2178_s1 = inlined_call_operand.vmem [shape: f32[4,32], index: 1, kind: input, shape index: {}]   ;;  %s2179_s2 = inlined_call_operand.vmem [shape: f32[32,128], index: 2, kind: input, shape index: {}]   ;;  %s2180_s3 = inlined_call_operand.vmem [shape: f32[32,128], index: 3, kind: input, shape index: {}]   ;;  %s2181_s4 = inlined_call_operand.vmem [shape: f32[1,128], index: 4, kind: input, shape index: {}]   ;;  %s2182_s5 = inlined_call_operand.vmem [shape: f32[128,128], index: 5, kind: input, shape index: {}]   ;;  %s2183_s6 = inlined_call_operand.vmem [shape: f32[1,128], index: 6, kind: input, shape index: {}]   ;;  %s2184_s7 = inlined_call_operand.vmem [shape: f32[128,128], index: 7, kind: input, shape index: {}]   ;;  %s2185_s8 = inlined_call_operand.vmem [shape: f32[1,128], index: 8, kind: input, shape index: {}]   ;;  %s2186_s9 = inlined_call_operand.vmem [shape: f32[128,128], index: 9, kind: input, shape index: {}]   ;;  %s2187_s10 = inlined_call_operand.vmem [shape: f32[1,128], index: 10, kind: input, shape index: {}]   ;;  %s2188_s11 = inlined_call_operand.vmem [shape: f32[48,128], index: 11, kind: output, shape index: {}]  }
   0x1 LB: > { %s1431_s18 = sadd.s32 4294967295, %s1820_s17   ;;  %p1435_p0 = scmp.ge.s32.totalorder %s1820_s17, 1  ;;  %s1820_s17 = sphi %s1888_s17, %s21_s17  }
   0x2   : > { %p338_p1 = scmp.lt.s32.totalorder %s1820_s17, 4 }
   0x4   : > { %p339_p2 = pnand %p1435_p0, %p338_p1 }
   0x5   : > { %v392_v0 = vld [vmem:[%s2178_s1] sm:$0xf] (!%p339_p2)  ;;  %vm400_vm0 = vcmask (!%p339_p2), 1043456   ;;  %s1436_s21 = sshll.u32 (!%p339_p2), %s1431_s18, 1  ;;  %vm393_vm1 = vcmask (!%p339_p2), 31744   ;;  %v898_v4 = vld [vmem:[%s2180_s3 + $0x8] sm:$0xff] (!%p339_p2) }
   0x6   : > { %342 = sbr.rel (%p339_p2) target bundleno = 1198 (0x4ae), region = 64  ;;  %1538 = vmatprep.subr.msk.mxu1 (!%p339_p2), %vm400_vm0, %v392_v0  ;;  %p379_p3 = scmp.lt.s32.totalorder (!%p339_p2), %s1436_s21, 5  ;;  %v897_v3 = vld [vmem:[%s2180_s3] sm:$0xff] (!%p339_p2)  ;;  %v899_v5 = vld [vmem:[%s2180_s3 + $0x10] sm:$0xff] (!%p339_p2)  ;;  %v900_v7 = vld [vmem:[%s2180_s3 + $0x18] sm:$0xff] (!%p339_p2) }
   0x7   : > { %1539 = vmatpush3.msk.msra.mxu1 (!%p339_p2), %vm400_vm0, %v392_v0  ;;  %v1670_v6 = vpack.c.bf16 (!%p339_p2), %v898_v4, %v897_v3  ;;  %v1674_v8 = vpack.c.bf16 (!%p339_p2), %v900_v7, %v899_v5  ;;  %v893_v9 = vld [vmem:[%s2179_s2] sm:$0xff] (!%p339_p2)  ;;  %v894_v10 = vld [vmem:[%s2179_s2 + $0x8] sm:$0xff] (!%p339_p2)  ;;  %v1077_v14 = vld [vmem:[%s2182_s5 + $0x10] sm:$0xff] (!%p339_p2)  ;;  %v1822_v55 = vmov (!%p339_p2), 683565275  }
   0x8   : > { %v1925_v11 = vpack.c.bf16 (!%p339_p2), %v894_v10, %v893_v9  ;;  %v1075_v12 = vld [vmem:[%s2182_s5] sm:$0xff] (!%p339_p2)  ;;  %v1076_v13 = vld [vmem:[%s2182_s5 + $0x8] sm:$0xff] (!%p339_p2)  ;;  %v1078_v16 = vld [vmem:[%s2182_s5 + $0x18] sm:$0xff] (!%p339_p2)  ;;  %v1823_v59 = vmov (!%p339_p2), 2475754826  }
   0x9   : > { %1671 = vmatprep.subr.bf16.mxu1 (!%p339_p2), %v1670_v6  ;;  %v1686_v15 = vpack.c.bf16 (!%p339_p2), %v1076_v13, %v1075_v12  ;;  %v1690_v17 = vpack.c.bf16 (!%p339_p2), %v1078_v16, %v1077_v14  ;;  %v1079_v18 = vld [vmem:[%s2182_s5 + $0x20] sm:$0xff] (!%p339_p2)  ;;  %v1080_v19 = vld [vmem:[%s2182_s5 + $0x28] sm:$0xff] (!%p339_p2)  ;;  %v1081_v21 = vld [vmem:[%s2182_s5 + $0x30] sm:$0xff] (!%p339_p2)  ;;  %v1824_v61 = vmov (!%p339_p2), 2131351028  }
   0xa   : > { %v1694_v20 = vpack.c.bf16 (!%p339_p2), %v1080_v19, %v1079_v18  ;;  %v1082_v22 = vld [vmem:[%s2182_s5 + $0x38] sm:$0xff] (!%p339_p2)  ;;  %v1083_v24 = vld [vmem:[%s2182_s5 + $0x40] sm:$0xff] (!%p339_p2)  ;;  %v1084_v25 = vld [vmem:[%s2182_s5 + $0x48] sm:$0xff] (!%p339_p2)  ;;  %v1825_v63 = vmov (!%p339_p2), 2102212464  }
   0xb   : > { %1687 = vmatprep.subr.bf16.mxu0 (!%p339_p2), %v1686_v15  ;;  %v1698_v23 = vpack.c.bf16 (!%p339_p2), %v1082_v22, %v1081_v21  ;;  %v1702_v26 = vpack.c.bf16 (!%p339_p2), %v1084_v25, %v1083_v24  ;;  %v1085_v27 = vld [vmem:[%s2182_s5 + $0x50] sm:$0xff] (!%p339_p2)  ;;  %v1086_v28 = vld [vmem:[%s2182_s5 + $0x58] sm:$0xff] (!%p339_p2)  ;;  %v1087_v30 = vld [vmem:[%s2182_s5 + $0x60] sm:$0xff] (!%p339_p2) }
   0xc   : > { %1689 = vmatpush3.bf16.msra.mxu0 (!%p339_p2), %v1686_v15  ;;  %v1706_v29 = vpack.c.bf16 (!%p339_p2), %v1086_v28, %v1085_v27  ;;  %v1088_v31 = vld [vmem:[%s2182_s5 + $0x68] sm:$0xff] (!%p339_p2) }
   0xd   : > { %s2192_s21 = smov (!%p379_p3, %s1436_s21), 5  ;;  %1691 = vmatprep.subr.bf16.mxu0 %v1690_v17  ;;  %v1710_v32 = vpack.c.bf16 %v1088_v31, %v1087_v30 }
   0xe   : > { %s1437_s22 = sshll.u32 %s2192_s21, 3 }
   0xf   : > { %s382_s25 = scalar_lea.vmem %s2177_s0, %s1437_s22  ;;  %s388_s18 = scalar_lea.vmem %s2188_s11, %s1437_s22 }
  0x10   : > { %v390_v1 = vld [vmem:[%s382_s25] sm:$0xff]  ;;  %v391_v2 = vld [vmem:[%s382_s25 + $0x8] sm:$0xff]  ;;  %1693 = vmatpush3.bf16.msra.mxu0 %v1690_v17 }
  0x11   : > { %1540 = vmatprep.mubr.msk.f32.mxu1 %vm393_vm1, %v390_v1  ;;  %1695 = vmatprep.subr.bf16.mxu0 %v1694_v20  ;;  %v1826_v1 = vmov 920167782  }
  0x12   : > { %1541 = vmatmul.mubr.msk.f32.vlgmr.msra.gmra.mrb[0].mxu1 %vm393_vm1, %v391_v2 }
  0x13   : > { %1673 = vmatpush3.bf16.msra.mxu1 %v1670_v6 }
  0x14   : > { %1675 = vmatprep.subr.bf16.mxu1 %v1674_v8  ;;  %1697 = vmatpush3.bf16.msra.mxu0 %v1694_v20 }
  0x15   : > { %1699 = vmatprep.subr.bf16.mxu0 %v1698_v23 }
  0x17   : > { %1677 = vmatpush3.bf16.msra.mxu1 %v1674_v8  ;;  %v1827_v8 = vmov 1326507024  }
  0x18   : > { %1679 = vmatprep.subr.bf16.mxu1 %v1925_v11  ;;  %1701 = vmatpush3.bf16.msra.mxu0 %v1698_v23 }
  0x19   : > { %1703 = vmatprep.subr.bf16.mxu0 %v1702_v26 }
  0x1c   : > { %1705 = vmatpush3.bf16.msra.mxu0 %v1702_v26 }
  0x1d   : > { %1707 = vmatprep.subr.bf16.mxu0 %v1706_v29 }
  0x20   : > { %1709 = vmatpush3.bf16.msra.mxu0 %v1706_v29 }
  0x21   : > { %1711 = vmatprep.subr.bf16.mxu0 %v1710_v32 }
  0x24   : > { %1713 = vmatpush3.bf16.msra.mxu0 %v1710_v32 }
  0xe5   : > { %v1970_v33 = vpop.f32.mrb[0].mxu1 }
  0xe6   : > { %v582_v34 = vand.u32 2147483647, %v1970_v33  ;;  %v585_v35 = vand.u32 2139095040, %v1970_v33  ;;  %v1974_v36 = vpop.f32.mrb[1].mxu1  ;;  %vm584_vm0 = vcmp.lt.s32.totalorder %v1970_v33, 0 }
  0xe7   : > { %v482_v37 = vand.u32 2139095040, %v1974_v36  ;;  %v479_v40 = vand.u32 2147483647, %v1974_v36 }
  0xe8   : > { %v586_v38 = vshrl.u32 %v585_v35, 23  ;;  %v589_v39 = vand.u32 8388607, %v582_v34  ;;  %vm2025_vm1 = vcmp.le.f32.partialorder %v582_v34, 0.7853982 }
  0xe9   : > { %v483_v41 = vshrl.u32 %v482_v37, 23  ;;  %v1982_v46 = vand.u32 8388607, %v479_v40 }
  0xea   : > { %v1447_v42 = vadd.s32 4294967169, %v586_v38  ;;  %v590_v45 = vor.u32 8388608, %v589_v39 }
  0xeb   : > { %v1443_v43 = vadd.s32 4294967169, %v483_v41  ;;  %v487_v53 = vor.u32 8388608, %v1982_v46 }
  0xec   : > { %v592_v44 = vadd.s32 1, %v1447_v42  ;;  %v1984_v52 = vshll.u32 %v590_v45, 8 }
  0xed   : > { %v489_v47 = vadd.s32 1, %v1443_v43 }
  0xee   : > { %vm593_vm2 = vcmp.gt.s32.totalorder %v592_v44, 0 }
  0xef   : > { %v594_v48 = vsel %vm593_vm2, %v592_v44, 0  ;;  %vm490_vm3 = vcmp.gt.s32.totalorder %v489_v47, 0  ;;  %vm481_vm2 = vcmp.lt.s32.totalorder %v1974_v36, 0 }
  0xf0   : > { %v595_v49 = vshrl.u32 %v594_v48, 5  ;;  %v596_v50 = vand.u32 31, %v594_v48  ;;  %v491_v51 = vsel %vm490_vm3, %v489_v47, 0  ;;  %v527_v48 = vshll.u32 %v487_v53, 8 }
  0xf1   : > { %v1987_v57 = vshrl.u32 %v491_v51, 5  ;;  %v493_v58 = vand.u32 31, %v491_v51  ;;  %vm480_vm3 = vcmp.le.f32.partialorder %v479_v40, 0.7853982 }
  0xf2   : > { %v597_v54 = vsub.s32 32, %v596_v50  ;;  %v599_v56 = vshll.u32 %v1822_v55, %v596_v50  ;;  %v602_v60 = vshll.u32 %v1823_v59, %v596_v50  ;;  %v605_v62 = vshll.u32 %v1824_v61, %v596_v50 }
  0xf3   : > { %v608_v0 = vshll.u32 %v1825_v63, %v596_v50  ;;  %v611_v2 = vshll.u32 %v1826_v1, %v596_v50  ;;  %vm614_vm4 = vcmp.lt.s32.totalorder %v595_v49, 1  ;;  %vm615_vm5 = vcmp.lt.s32.totalorder %v595_v49, 2 }
  0xf4   : > { %v600_v3 = vshrl.u32 %v1823_v59, %v597_v54  ;;  %v603_v4 = vshrl.u32 %v1824_v61, %v597_v54  ;;  %v606_v5 = vshrl.u32 %v1825_v63, %v597_v54  ;;  %v598_v6 = vshrl.u32 %v1822_v55, %v597_v54 }
  0xf5   : > { %v609_v7 = vshrl.u32 %v1826_v1, %v597_v54  ;;  %v612_v9 = vshrl.u32 %v1827_v8, %v597_v54  ;;  %v494_v14 = vsub.s32 32, %v493_v58  ;;  %vm616_vm6 = vcmp.lt.s32.totalorder %v595_v49, 3 }
  0xf6   : > { %v601_v10 = vor.u32 %v600_v3, %v599_v56  ;;  %v604_v12 = vor.u32 %v603_v4, %v602_v60  ;;  %v607_v13 = vor.u32 %v606_v5, %v605_v62  ;;  %vm617_vm7 = vcmp.lt.s32.totalorder %v595_v49, 4 }
  0xf7   : > { %v610_v15 = vor.u32 %v609_v7, %v608_v0  ;;  %v613_v16 = vor.u32 %v612_v9, %v611_v2  ;;  %v496_v24 = vshll.u32 %v1822_v55, %v493_v58  ;;  %v497_v27 = vshrl.u32 %v1823_v59, %v494_v14 }
  0xf8   : > { %v618_v17 = vsel %vm614_vm4, %v598_v6, %v601_v10  ;;  %v619_v18 = vsel %vm617_vm7, %v607_v13, 2102212464  ;;  %v622_v19 = vsel %vm614_vm4, %v601_v10, %v604_v12  ;;  %v626_v20 = vsel %vm614_vm4, %v604_v12, %v607_v13 }
  0xf9   : > { %v620_v21 = vsel %vm616_vm6, %v604_v12, %v619_v18  ;;  %v623_v22 = vsel %vm617_vm7, %v610_v15, 920167782  ;;  %v627_v23 = vsel %vm617_vm7, %v613_v16, 1326507024  ;;  %v499_v28 = vshll.u32 %v1823_v59, %v493_v58 }
  0xfa   : > { %v624_v25 = vsel %vm616_vm6, %v607_v13, %v623_v22  ;;  %v628_v26 = vsel %vm616_vm6, %v610_v15, %v627_v23  ;;  %v621_v29 = vsel %vm615_vm5, %v618_v17, %v620_v21  ;;  %v500_v32 = vshrl.u32 %v1824_v61, %v494_v14 }
  0xfb   : > { %v625_v30 = vsel %vm615_vm5, %v622_v19, %v624_v25  ;;  %v629_v31 = vsel %vm615_vm5, %v626_v20, %v628_v26  ;;  %v498_v41 = vor.u32 %v497_v27, %v496_v24  ;;  %v502_v43 = vshll.u32 %v1824_v61, %v493_v58 }
  0xfc   : > { %v1996_v35 = vmul.u32.u64.low %v1984_v52, %v629_v31  ;;  %v1997_v37 = vmul.u32.u64.high %v1984_v52, %v629_v31, %v1996_v35  ;;  %v2000_v38 = vmul.u32.u64.low %v1984_v52, %v625_v30  ;;  %v2001_v39 = vmul.u32.u64.high %v1984_v52, %v625_v30, %v2000_v38 }
  0xfd   : > { %v501_v42 = vor.u32 %v500_v32, %v499_v28  ;;  %v503_v44 = vshrl.u32 %v1825_v63, %v494_v14  ;;  %v505_v45 = vshll.u32 %v1825_v63, %v493_v58  ;;  %v506_v46 = vshrl.u32 %v1826_v1, %v494_v14 }
  0xfe   : > { %v509_v47 = vshrl.u32 %v1827_v8, %v494_v14  ;;  %v637_v49 = vmul.u32 %v1984_v52, %v621_v29  ;;  %v495_v50 = vshrl.u32 %v1822_v55, %v494_v14  ;;  %v508_v54 = vshll.u32 %v1826_v1, %v493_v58 }
  0xff   : > { %v504_v51 = vor.u32 %v503_v44, %v502_v43  ;;  %vm639_vm8 = vc.u32 %v1997_v37, %v2000_v38  ;;  %v640_v56 = vadd.s32 1, %v2001_v39  ;;  %v507_v59 = vor.u32 %v506_v46, %v505_v45 }
 0x100   : > { %vm511_vm9 = vcmp.lt.s32.totalorder %v1987_v57, 1  ;;  %v510_v60 = vor.u32 %v509_v47, %v508_v54  ;;  %vm513_vm10 = vcmp.lt.s32.totalorder %v1987_v57, 3  ;;  %vm514_vm11 = vcmp.lt.s32.totalorder %v1987_v57, 4 }
 0x101   : > { %v519_v61 = vsel %vm511_vm9, %v498_v41, %v501_v42  ;;  %v641_v53 = vsel %vm639_vm8, %v640_v56, %v2001_v39  ;;  %v516_v62 = vsel %vm514_vm11, %v504_v51, 2102212464  ;;  %v520_v52 = vsel %vm514_vm11, %v507_v59, 920167782 }
 0x102   : > { %v523_v55 = vsel %vm511_vm9, %v501_v42, %v504_v51  ;;  %v642_v63 = vadd.s32 %v641_v53, %v637_v49  ;;  %vm512_vm12 = vcmp.lt.s32.totalorder %v1987_v57, 2  ;;  %v521_v58 = vsel %vm513_vm10, %v504_v51, %v520_v52 }
 0x103   : > { %v524_v0 = vsel %vm514_vm11, %v510_v60, 1326507024  ;;  %v515_v1 = vsel %vm511_vm9, %v495_v50, %v498_v41  ;;  %v517_v2 = vsel %vm513_vm10, %v501_v42, %v516_v62  ;;  %v522_v3 = vsel %vm512_vm12, %v519_v61, %v521_v58  ;;  %v1183_v62 = vld [vmem:[%s2184_s7 + $0x40] sm:$0xff] }
 0x104   : > { %v525_v4 = vsel %vm513_vm10, %v507_v59, %v524_v0  ;;  %v643_v5 = vadd.s32 536870912, %v642_v63  ;;  %v2011_v7 = vmul.u32.u64.low %v527_v48, %v522_v3  ;;  %v2012_v8 = vmul.u32.u64.high %v527_v48, %v522_v3, %v2011_v7 }
 0x105   : > { %v526_v6 = vsel %vm512_vm12, %v523_v55, %v525_v4  ;;  %v518_v13 = vsel %vm512_vm12, %v515_v1, %v517_v2  ;;  %v638_v29 = vadd.s32 %v2000_v38, %v1997_v37  ;;  %vm901_vm4 = vcmask 261120  }
 0x106   : > { %v2014_v9 = vmul.u32.u64.low %v527_v48, %v526_v6  ;;  %v2015_v10 = vmul.u32.u64.high %v527_v48, %v526_v6, %v2014_v9  ;;  %v644_v12 = vshrl.u32 %v643_v5, 30  ;;  %v537_v15 = vadd.s32 1, %v2012_v8 }
 0x107   : > { %v534_v57 = vmul.u32 %v527_v48, %v518_v13 }
 0x108   : > { %v645_v14 = vshll.u32 %v644_v12, 30  ;;  %vm536_vm13 = vc.u32 %v2015_v10, %v2011_v7  ;;  %v535_v50 = vadd.s32 %v2011_v7, %v2015_v10  ;;  %v668_v58 = vsub.s32 4, %v644_v12 }
 0x109   : > { %v538_v17 = vsel %vm536_vm13, %v537_v15, %v2012_v8 }
 0x10a   : > { %v646_v16 = vsub.s32 %v642_v63, %v645_v14  ;;  %v539_v18 = vadd.s32 %v538_v17, %v534_v57  ;;  %v669_v4 = vsel %vm584_vm0, %v668_v58, %v644_v12  ;;  %v1186_v58 = vld [vmem:[%s2184_s7 + $0x58] sm:$0xff] }
 0x10b   : > { %v671_v7 = vsel %vm2025_vm1, 0, %v669_v4  ;;  %v1463_v4 = vld [vmem:[%s2181_s4] ss:$0 sm:$0xff] }
 0x10c   : > { %v648_v19 = vsub.s32 0, %v646_v16  ;;  %v540_v20 = vadd.s32 536870912, %v539_v18  ;;  %v882_v10 = vadd.s32 3, %v671_v7 }
 0x10e   : > { %v1448_v21 = vmin.u32 %v648_v19, %v646_v16  ;;  %v541_v22 = vshrl.u32 %v540_v20, 30  ;;  %v883_v15 = vand.u32 3, %v882_v10  ;;  %v675_v19 = vand.u32 3, %v671_v7  ;;  %v1189_v10 = vld [vmem:[%s2184_s7 + $0x70] sm:$0xff] }
 0x110   : > { %v650_v23 = vclz %v1448_v21  ;;  %v542_v24 = vshll.u32 %v541_v22, 30  ;;  %v565_v3 = vsub.s32 4, %v541_v22  ;;  %vm885_vm5 = vcmp.eq.s32.totalorder %v883_v15, 0 }
 0x111   : > { %vm888_vm6 = vcmp.eq.s32.totalorder %v883_v15, 2  ;;  %vm884_vm7 = vcmp.lt.s32.totalorder %v883_v15, 2  ;;  %v1276_v15 = vld [vmem:[%s2186_s9 + $0x8] sm:$0xff] }
 0x112   : > { %v1449_v25 = vadd.s32 4294967294, %v650_v23  ;;  %v543_v26 = vsub.s32 %v539_v18, %v542_v24  ;;  %v566_v6 = vsel %vm481_vm2, %v565_v3, %v541_v22 }
 0x113   : > { %v568_v9 = vsel %vm480_vm3, 0, %v566_v6 }
 0x114   : > { %vm1450_vm14 = vcmp.lt.s32.totalorder %v1449_v25, 0  ;;  %v545_v28 = vsub.s32 0, %v543_v26  ;;  %v778_v12 = vadd.s32 3, %v568_v9  ;;  %v572_v18 = vand.u32 3, %v568_v9 }
 0x115   : > { %v653_v27 = vsel %vm1450_vm14, 0, %v1449_v25  ;;  %vm571_vm14 = vweird.f32 %v1974_v36 }
 0x116   : > { %v654_v30 = vsub.s32 32, %v653_v27  ;;  %v658_v31 = vsub.s32 4294967266, %v653_v27  ;;  %v1444_v32 = vmin.u32 %v545_v28, %v543_v26  ;;  %v655_v35 = vshll.u32 %v646_v16, %v653_v27  ;;  %v895_v27 = vld [vmem:[%s2179_s2 + $0x10] sm:$0xff]  ;;  %v896_v28 = vld [vmem:[%s2179_s2 + $0x18] sm:$0xff] }
 0x117   : > { %v779_v17 = vand.u32 3, %v778_v12  ;;  %vm573_vm9 = vcmp.lt.s32.totalorder %v572_v18, 2  ;;  %vm577_vm10 = vcmp.eq.s32.totalorder %v572_v18, 2  ;;  %vm574_vm12 = vcmp.eq.s32.totalorder %v572_v18, 0  ;;  %v1275_v12 = vld [vmem:[%s2186_s9] sm:$0xff] }
 0x118   : > { %v656_v39 = vshrl.u32 %v638_v29, %v654_v30  ;;  %v659_v41 = vadd.s32 127, %v658_v31  ;;  %v547_v42 = vclz %v1444_v32 }
 0x119   : > { %vm784_vm8 = vcmp.eq.s32.totalorder %v779_v17, 2  ;;  %vm781_vm11 = vcmp.eq.s32.totalorder %v779_v17, 0  ;;  %vm780_vm13 = vcmp.lt.s32.totalorder %v779_v17, 2  ;;  %v1278_v17 = vld [vmem:[%s2186_s9 + $0x18] sm:$0xff] }
 0x11a   : > { %v657_v43 = vor.u32 %v656_v39, %v655_v35  ;;  %v660_v44 = vshll.u32 %v659_v41, 23  ;;  %v1445_v45 = vadd.s32 4294967294, %v547_v42  ;;  %v1682_v41 = vpack.c.bf16 %v896_v28, %v895_v27  ;;  %v1285_v27 = vld [vmem:[%s2186_s9 + $0x50] sm:$0xff]  ;;  %v1286_v28 = vld [vmem:[%s2186_s9 + $0x58] sm:$0xff] }
 0x11c   : > { %v661_v46 = vor.u32 4788187, %v660_v44  ;;  %vm1446_vm15 = vcmp.lt.s32.totalorder %v1445_v45, 0  ;;  %v664_v48 = vcvt.s32.f32 %v657_v43 }
 0x11d   : > { %v550_v49 = vsel %vm1446_vm15, 0, %v1445_v45  ;;  %vm674_vm15 = vweird.f32 %v1970_v33 }
 0x11e   : > { %v662_v47 = vand.u32 2147483647, %v661_v46  ;;  %v551_v51 = vsub.s32 32, %v550_v49  ;;  %v555_v54 = vsub.s32 4294967266, %v550_v49  ;;  %v552_v38 = vshll.u32 %v543_v26, %v550_v49  ;;  %v1175_v49 = vld [vmem:[%s2184_s7] sm:$0xff] }
 0x120   : > { %v665_v37 = vmul.f32 %v664_v48, %v662_v47  ;;  %v553_v56 = vshrl.u32 %v535_v50, %v551_v51  ;;  %v556_v59 = vadd.s32 127, %v555_v54  ;;  %v1089_v47 = vld [vmem:[%s2182_s5 + $0x70] sm:$0xff]  ;;  %v1178_v54 = vld [vmem:[%s2184_s7 + $0x18] sm:$0xff] }
 0x121   : > { %v1177_v50 = vld [vmem:[%s2184_s7 + $0x10] sm:$0xff] }
 0x122   : > { %v666_v60 = vxor.u32 2147483648, %v665_v37  ;;  %v554_v61 = vor.u32 %v553_v56, %v552_v38  ;;  %v557_v53 = vshll.u32 %v556_v59, 23  ;;  %v1179_v38 = vld [vmem:[%s2184_s7 + $0x20] sm:$0xff]  ;;  %v1180_v56 = vld [vmem:[%s2184_s7 + $0x28] sm:$0xff] }
 0x123   : > { %v1726_v59 = vpack.c.bf16 %v1180_v56, %v1179_v38 }
 0x124   : > { %v667_v52 = vsel %vm584_vm0, %v666_v60, %v665_v37  ;;  %v558_v63 = vor.u32 4788187, %v557_v53  ;;  %v561_v1 = vcvt.s32.f32 %v554_v61  ;;  %vm677_vm0 = vcmp.eq.s32.totalorder %v675_v19, 0  ;;  %v1181_v60 = vld [vmem:[%s2184_s7 + $0x30] sm:$0xff]  ;;  %v1182_v61 = vld [vmem:[%s2184_s7 + $0x38] sm:$0xff] }
 0x125   : > { %v670_v55 = vsel %vm2025_vm1, %v1970_v33, %v667_v52  ;;  %vm680_vm1 = vcmp.eq.s32.totalorder %v675_v19, 2  ;;  %v1176_v33 = vld [vmem:[%s2184_s7 + $0x8] sm:$0xff]  ;;  %v1722_v37 = vpack.c.bf16 %v1178_v54, %v1177_v50  ;;  %v1730_v53 = vpack.c.bf16 %v1182_v61, %v1181_v60 }
 0x126   : > { %v559_v0 = vand.u32 2147483647, %v558_v63  ;;  %1806 = vcosq.f32 %v670_v55  ;;  %v1718_v51 = vpack.c.bf16 %v1176_v33, %v1175_v49  ;;  %v1184_v52 = vld [vmem:[%s2184_s7 + $0x48] sm:$0xff]  ;;  %v1185_v63 = vld [vmem:[%s2184_s7 + $0x50] sm:$0xff] }
 0x127   : > { %1808 = vsinq.f32 %v670_v55  ;;  %v1734_v55 = vpack.c.bf16 %v1184_v52, %v1183_v62 }
 0x128   : > { %v562_v2 = vmul.f32 %v561_v1, %v559_v0  ;;  %v1738_v0 = vpack.c.bf16 %v1186_v58, %v1185_v63  ;;  %v1187_v1 = vld [vmem:[%s2184_s7 + $0x60] sm:$0xff] }
 0x12a   : > { %v563_v5 = vxor.u32 2147483648, %v562_v2 }
 0x12c   : > { %v564_v34 = vsel %vm481_vm2, %v563_v5, %v562_v2  ;;  %vm676_vm2 = vcmp.lt.s32.totalorder %v675_v19, 2  ;;  %v1188_v2 = vld [vmem:[%s2184_s7 + $0x68] sm:$0xff] }
 0x12d   : > { %v567_v8 = vsel %vm480_vm3, %v1974_v36, %v564_v34  ;;  %v1742_v3 = vpack.c.bf16 %v1188_v2, %v1187_v1  ;;  %v1280_v19 = vld [vmem:[%s2186_s9 + $0x28] sm:$0xff] }
 0x12e   : > { %1810 = vcosq.f32 %v567_v8 }
 0x12f   : > { %1812 = vsinq.f32 %v567_v8 }
 0x130   : > { %v1807_v13 = vpop.eup %1806 }
 0x131   : > { %v1809_v14 = vpop.eup %1808  ;;  %v681_v16 = vxor.u32 2147483648, %v1807_v13 }
 0x132   : > { %v678_v57 = vxor.u32 2147483648, %v1809_v14 }
 0x133   : > { %v890_v23 = vsel %vm888_vm6, %v681_v16, %v1809_v14  ;;  %v682_v44 = vsel %vm680_vm1, %v681_v16, %v1809_v14  ;;  %v1750_v16 = vpack.c.bf16 %v1276_v15, %v1275_v12 }
 0x134   : > { %v887_v22 = vsel %vm885_vm5, %v1807_v13, %v678_v57  ;;  %v679_v36 = vsel %vm677_vm0, %v1807_v13, %v678_v57  ;;  %v1190_v13 = vld [vmem:[%s2184_s7 + $0x78] sm:$0xff]  ;;  %v1277_v57 = vld [vmem:[%s2186_s9 + $0x10] sm:$0xff] }
 0x135   : > { %v891_v30 = vsel %vm884_vm7, %v887_v22, %v890_v23  ;;  %v683_v45 = vsel %vm676_vm2, %v679_v36, %v682_v44  ;;  %v1746_v14 = vpack.c.bf16 %v1190_v13, %v1189_v10  ;;  %v1754_v18 = vpack.c.bf16 %v1278_v17, %v1277_v57  ;;  %v1282_v22 = vld [vmem:[%s2186_s9 + $0x38] sm:$0xff] }
 0x136   : > { %v892_v42 = vsel %vm674_vm15, nan, %v891_v30  ;;  %v684_v46 = vsel %vm674_vm15, nan, %v683_v45  ;;  %v1287_v30 = vld [vmem:[%s2186_s9 + $0x60] sm:$0xff]  ;;  %v1289_v45 = vld [vmem:[%s2186_s9 + $0x70] sm:$0xff] }
 0x138   : > { %v1811_v40 = vpop.eup %1810 }
 0x139   : > { %v1813_v20 = vpop.eup %1812  ;;  %v578_v21 = vxor.u32 2147483648, %v1811_v40 }
 0x13a   : > { %v575_v24 = vxor.u32 2147483648, %v1813_v20 }
 0x13b   : > { %v786_v25 = vsel %vm784_vm8, %v578_v21, %v1813_v20  ;;  %v579_v26 = vsel %vm577_vm10, %v578_v21, %v1813_v20  ;;  %v1281_v21 = vld [vmem:[%s2186_s9 + $0x30] sm:$0xff] }
 0x13c   : > { %v783_v29 = vsel %vm781_vm11, %v1811_v40, %v575_v24  ;;  %v576_v31 = vsel %vm574_vm12, %v1811_v40, %v575_v24  ;;  %v1279_v40 = vld [vmem:[%s2186_s9 + $0x20] sm:$0xff]  ;;  %v1762_v23 = vpack.c.bf16 %v1282_v22, %v1281_v21 }
 0x13d   : > { %v787_v32 = vsel %vm780_vm13, %v783_v29, %v786_v25  ;;  %v580_v35 = vsel %vm573_vm9, %v576_v31, %v579_v26  ;;  %v1758_v20 = vpack.c.bf16 %v1280_v19, %v1279_v40  ;;  %v1283_v24 = vld [vmem:[%s2186_s9 + $0x40] sm:$0xff]  ;;  %v1284_v25 = vld [vmem:[%s2186_s9 + $0x48] sm:$0xff]  ;;  %v1770_v29 = vpack.c.bf16 %v1286_v28, %v1285_v27 }
 0x13e   : > { %v788_v39 = vsel %vm571_vm14, nan, %v787_v32  ;;  %v581_v43 = vsel %vm571_vm14, nan, %v580_v35  ;;  %v1766_v26 = vpack.c.bf16 %v1284_v25, %v1283_v24  ;;  %v1288_v31 = vld [vmem:[%s2186_s9 + $0x68] sm:$0xff]  ;;  %v1464_v35 = vld [vmem:[%s2183_s6] ss:$0 sm:$0xff] }
 0x13f   : > { %1551 = vmatprep.mubr.msk.f32.mxu1 %vm901_vm4, %v788_v39  ;;  %v1774_v32 = vpack.c.bf16 %v1288_v31, %v1287_v30 }
 0x140   : > { %1552 = vmatmul.mubr.msk.f32.vlgmr.msra.gmra.mrb[2].mxu1 %vm901_vm4, %v892_v42 }
 0x141   : > { %1681 = vmatpush3.bf16.msra.mxu1 %v1925_v11  ;;  %1562 = vmatprep.mubr.msk.f32.mxu1 %vm901_vm4, %v581_v43  ;;  %v1090_v11 = vld [vmem:[%s2182_s5 + $0x78] sm:$0xff] }
 0x142   : > { %1683 = vmatprep.subr.bf16.mxu1 %v1682_v41  ;;  %v1714_v48 = vpack.c.bf16 %v1090_v11, %v1089_v47  ;;  %v1465_v11 = vld [vmem:[%s2185_s8] ss:$0 sm:$0xff] }
 0x144   : > { %1715 = vmatprep.subr.bf16.mxu0 %v1714_v48 }
 0x145   : > { %1685 = vmatpush3.bf16.msra.mxu1 %v1682_v41  ;;  %1717 = vmatpush3.bf16.msra.mxu0 %v1714_v48 }
 0x146   : > { %1719 = vmatprep.subr.bf16.mxu1 %v1718_v51  ;;  %1751 = vmatprep.subr.bf16.mxu0 %v1750_v16 }
 0x148   : > { %1563 = vmatmul.mubr.msk.f32.vlgmr.msra.gmra.mrb[2].mxu1 %vm901_vm4, %v684_v46  ;;  %v1290_v46 = vld [vmem:[%s2186_s9 + $0x78] sm:$0xff] }
 0x149   : > { %1721 = vmatpush3.bf16.msra.mxu1 %v1718_v51  ;;  %v1778_v47 = vpack.c.bf16 %v1290_v46, %v1289_v45 }
 0x14a   : > { %1723 = vmatprep.subr.bf16.mxu1 %v1722_v37 }
 0x14d   : > { %1725 = vmatpush3.bf16.msra.mxu1 %v1722_v37  ;;  %v1466_v37 = vld [vmem:[%s2187_s10] ss:$0 sm:$0xff] }
 0x14e   : > { %1727 = vmatprep.subr.bf16.mxu1 %v1726_v59 }
 0x151   : > { %1729 = vmatpush3.bf16.msra.mxu1 %v1726_v59 }
 0x152   : > { %1731 = vmatprep.subr.bf16.mxu1 %v1730_v53 }
 0x155   : > { %1733 = vmatpush3.bf16.msra.mxu1 %v1730_v53 }
 0x156   : > { %1735 = vmatprep.subr.bf16.mxu1 %v1734_v55 }
 0x159   : > { %1737 = vmatpush3.bf16.msra.mxu1 %v1734_v55 }
 0x15a   : > { %1739 = vmatprep.subr.bf16.mxu1 %v1738_v0 }
 0x15d   : > { %1741 = vmatpush3.bf16.msra.mxu1 %v1738_v0 }
 0x15e   : > { %1743 = vmatprep.subr.bf16.mxu1 %v1742_v3 }
 0x161   : > { %1745 = vmatpush3.bf16.msra.mxu1 %v1742_v3 }
 0x162   : > { %1747 = vmatprep.subr.bf16.mxu1 %v1746_v14 }
 0x165   : > { %1749 = vmatpush3.bf16.msra.mxu1 %v1746_v14 }
 0x21b   : > { %v1564_v5 = vpop.f32.mrb[2].mxu1 }
 0x21c   : > { %v1072_v34 = vadd.f32 %v1564_v5, %v1463_v4  ;;  %v1055_v6 = vpop.f32.mrb[3].mxu1 }
 0x21d   : > { %v1071_v7 = vadd.f32 %v1463_v4, %v1055_v6 }
 0x21e   : > { %v1074_v9 = vmax.f32 %v1072_v34, 0.0 }
 0x21f   : > { %v1073_v8 = vmax.f32 %v1071_v7, 0.0 }
 0x221   : > { %1597 = vmatprep.mubr.f32.mxu0 %v1073_v8 }
 0x222   : > { %1598 = vmatmul.mubr.f32.vlgmr.msra.gmra.mrb[0].mxu0 %v1074_v9 }
 0x223   : > { %1753 = vmatpush3.bf16.msra.mxu0 %v1750_v16 }
 0x224   : > { %1755 = vmatprep.subr.bf16.mxu0 %v1754_v18 }
 0x227   : > { %1757 = vmatpush3.bf16.msra.mxu0 %v1754_v18 }
 0x228   : > { %1759 = vmatprep.subr.bf16.mxu0 %v1758_v20 }
 0x22b   : > { %1761 = vmatpush3.bf16.msra.mxu0 %v1758_v20 }
 0x22c   : > { %1763 = vmatprep.subr.bf16.mxu0 %v1762_v23 }
 0x22f   : > { %1765 = vmatpush3.bf16.msra.mxu0 %v1762_v23 }
 0x230   : > { %1767 = vmatprep.subr.bf16.mxu0 %v1766_v26 }
 0x233   : > { %1769 = vmatpush3.bf16.msra.mxu0 %v1766_v26 }
 0x234   : > { %1771 = vmatprep.subr.bf16.mxu0 %v1770_v29 }
 0x237   : > { %1773 = vmatpush3.bf16.msra.mxu0 %v1770_v29 }
 0x238   : > { %1775 = vmatprep.subr.bf16.mxu0 %v1774_v32 }
 0x23b   : > { %1777 = vmatpush3.bf16.msra.mxu0 %v1774_v32 }
 0x23c   : > { %1779 = vmatprep.subr.bf16.mxu0 %v1778_v47 }
 0x23f   : > { %1781 = vmatpush3.bf16.msra.mxu0 %v1778_v47 }
 0x2f5   : > { %v1599_v39 = vpop.f32.mrb[0].mxu0 }
 0x2f6   : > { %v1170_v41 = vadd.f32 %v1599_v39, %v1464_v35  ;;  %v1164_v42 = vpop.f32.mrb[1].mxu0 }
 0x2f7   : > { %v1165_v43 = vadd.f32 %v1464_v35, %v1164_v42 }
 0x2f8   : > { %v1174_v44 = vmax.f32 %v1170_v41, 0.0 }
 0x2f9   : > { %v1173_v36 = vmax.f32 %v1165_v43, 0.0 }
 0x2fb   : > { %1632 = vmatprep.mubr.f32.mxu1 %v1173_v36 }
 0x2fc   : > { %1633 = vmatmul.mubr.f32.vlgmr.msra.gmra.mrb[4].mxu1 %v1174_v44 }
 0x3cf   : > { %v1634_v48 = vpop.f32.mrb[4].mxu1 }
 0x3d0   : > { %v1270_v49 = vadd.f32 %v1634_v48, %v1465_v11  ;;  %v1264_v33 = vpop.f32.mrb[5].mxu1 }
 0x3d1   : > { %v1265_v50 = vadd.f32 %v1465_v11, %v1264_v33 }
 0x3d2   : > { %v1274_v54 = vmax.f32 %v1270_v49, 0.0 }
 0x3d3   : > { %v1273_v51 = vmax.f32 %v1265_v50, 0.0 }
 0x3d5   : > { %1667 = vmatprep.mubr.f32.mxu0 %v1273_v51 }
 0x3d6   : > { %1668 = vmatmul.mubr.f32.vlgmr.msra.gmra.mrb[2].mxu0 %v1274_v54 }
 0x4a9   : > { %v1669_v38 = vpop.f32.mrb[2].mxu0 }
 0x4aa   : > { %v1364_v56 = vpop.f32.mrb[3].mxu0  ;;  %v1370_v60 = vadd.f32 %v1669_v38, %v1466_v37 }
 0x4ab   : > { %v1365_v59 = vadd.f32 %v1466_v37, %v1364_v56 }
 0x4ac   : > { %1374 = vst [vmem:[%s388_s18 + $0x8] sm:$0xff] %v1370_v60 }
 0x4ad   : > { %1373 = vst [vmem:[%s388_s18] sm:$0xff] %v1365_v59 }
 0x4ae PF: > { %s21_s17 = sadd.s32 1, %s1820_s17  }
 0x4af   : > { %p18_p4 = scmp.ge.s32.totalorder %s21_s17, 5  }
 0x4b1   :  { %20 = sbr.rel (!%p18_p4) target bundleno = 1 (0x1), region = 94 }

</bundles_post_ra>
